<compile_context>
chip_gen: v7x
topology: tpu7x:2x2x1
jax: 0.10.0
libtpu: 0.0.40
codegen_flags: <defaults>
</compile_context>

<pallas_src>
import math

import jax
import jax.numpy as jnp
from jax.experimental import pallas as pl
from jax.experimental.pallas import tpu as pltpu


def _resolve_shape(batch, total_elems, shape):
    """Resolve a torch-style view shape (supports a single -1)."""
    shape = list(shape)
    per_batch = total_elems // batch
    if -1 in shape:
        idx = shape.index(-1)
        known = 1
        for i, s in enumerate(shape):
            if i != idx:
                known *= s
        assert per_batch % known == 0, "view shape incompatible with input"
        shape[idx] = per_batch // known
    assert math.prod(shape) == per_batch, "view shape incompatible with input"
    return shape


def _make_dma_copy_kernel(chunks):
    """Build a kernel issuing one HBM->HBM DMA per (start, size) chunk (axis 0)."""

    def kernel(x_hbm_ref, o_hbm_ref, sem):
        n = len(chunks)
        copies = []
        for i, (start, size) in enumerate(chunks):
            if n == 1:
                src, dst = x_hbm_ref, o_hbm_ref
            else:
                src = x_hbm_ref.at[pl.ds(start, size)]
                dst = o_hbm_ref.at[pl.ds(start, size)]
            cp = pltpu.make_async_copy(src, dst, sem.at[i])
            cp.start()
            copies.append(cp)
        # All DMAs are in flight concurrently; now wait for completion.
        for cp in copies:
            cp.wait()

    return kernel


def pallas_view(x, shape):
    """Equivalent of View(shape)(x) for a contiguous input x."""
    batch = x.shape[0]
    total = math.prod(x.shape)
    out_shape = [batch] + _resolve_shape(batch, total, shape)

    itemsize = jnp.dtype(x.dtype).itemsize
    total_bytes = total * itemsize

    # A single large DMA already tracks raw copy bandwidth; for big tensors
    # split the leading axis into a few contiguous chunks so several DMAs are
    # in flight at once.  All static Python — no grid, no pipeline overhead.
    lead = x.shape[0]
    if total_bytes >= (8 << 20) and lead >= 2:
        n_chunks = min(4, lead)
    else:
        n_chunks = 1
    base, rem = divmod(lead, n_chunks)
    chunks = []
    start = 0
    for i in range(n_chunks):
        size = base + (1 if i < rem else 0)
        chunks.append((start, size))
        start += size

    copied = pl.pallas_call(
        _make_dma_copy_kernel(chunks),
        out_shape=jax.ShapeDtypeStruct(x.shape, x.dtype),
        in_specs=[pl.BlockSpec(memory_space=pl.ANY)],
        out_specs=pl.BlockSpec(memory_space=pl.ANY),
        scratch_shapes=[pltpu.SemaphoreType.DMA((n_chunks,))],
        # Pure copy: no flops, one read + one write of the whole tensor.
        cost_estimate=pl.CostEstimate(
            flops=0,
            transcendentals=0,
            bytes_accessed=2 * total_bytes,
        ),
    )(x)

    # The reshape itself is the actual "View" (metadata / layout-only op).
    return jnp.reshape(copied, out_shape)


if __name__ == "__main__":
    key = jax.random.PRNGKey(0)
    # Small NCHW input: batch=2, channels=4, spatial=16x16.
    x = jax.random.normal(key, (2, 4, 16, 16), dtype=jnp.float32)

    # View([-1, 16]) -> output shape (2, 64, 16)
    target_shape = [-1, 16]

    run = jax.jit(lambda a: pallas_view(a, target_shape))
    out = run(x)
    out = jax.block_until_ready(out)

    # Correctness check: torch .view on contiguous tensors == row-major reshape.
    ref = jnp.reshape(x, (x.shape[0], 64, 16))
    assert out.shape == (2, 64, 16), out.shape
    assert out.dtype == x.dtype
    assert bool(jnp.array_equal(out, ref))

    print("KERNEL_OK")
</pallas_src>

<mosaic_0001>
module attributes {stable_mosaic.version = 11 : i64} {
  func.func @kernel(%arg0: memref<2x4x16x16xf32, #tpu.memory_space<any>>, %arg1: memref<2x4x16x16xf32, #tpu.memory_space<any>>, %arg2: memref<1x!tpu.dma_semaphore, #tpu.memory_space<semaphore_mem>>) attributes {dimension_semantics = [], scalar_prefetch = 0 : i64, scratch_operands = 1 : i64, tpu.core_type = #tpu.core_type<tc>} {
    %c0_i32 = arith.constant 0 : i32
    %0 = tpu.memref_slice %arg2[%c0_i32] : memref<1x!tpu.dma_semaphore, #tpu.memory_space<semaphore_mem>> -> memref<1x!tpu.dma_semaphore, #tpu.memory_space<semaphore_mem>>
    %1 = tpu.memref_squeeze %0 : memref<1x!tpu.dma_semaphore, #tpu.memory_space<semaphore_mem>> -> memref<!tpu.dma_semaphore, #tpu.memory_space<semaphore_mem>>
    tpu.enqueue_dma source(%arg0 : memref<2x4x16x16xf32, #tpu.memory_space<any>>) target(%arg1 : memref<2x4x16x16xf32, #tpu.memory_space<any>>) target_semaphore(%1 : memref<!tpu.dma_semaphore, #tpu.memory_space<semaphore_mem>>)
    %c0_i32_0 = arith.constant 0 : i32
    %2 = tpu.memref_slice %arg2[%c0_i32_0] : memref<1x!tpu.dma_semaphore, #tpu.memory_space<semaphore_mem>> -> memref<1x!tpu.dma_semaphore, #tpu.memory_space<semaphore_mem>>
    %3 = tpu.memref_squeeze %2 : memref<1x!tpu.dma_semaphore, #tpu.memory_space<semaphore_mem>> -> memref<!tpu.dma_semaphore, #tpu.memory_space<semaphore_mem>>
    tpu.wait_dma2 semaphore(%3 : memref<!tpu.dma_semaphore, #tpu.memory_space<semaphore_mem>>) src(%arg0 : memref<2x4x16x16xf32, #tpu.memory_space<any>>) dst(%arg1 : memref<2x4x16x16xf32, #tpu.memory_space<any>>)
    return
  }
}

</mosaic_0001>

<bundles_post_ra>
// kernel: _lambda_.1
= control target key start
LH: loop header
LB: loop body
LE: loop exit
PB: predicated region body
PF: predicated region fallthrough
CT: control target
= control target key end

     0   :  { %s78_s0 = inlined_call_operand.hbm [shape: f32[2,4,16,16], index: 0, kind: input, shape index: {}]   ;;  %s79_s1 = inlined_call_operand.vmem [shape: f32[2,4,16,16], index: 1, kind: output, shape index: {}]  }
   0x1   :  { %s13_s8 = sshll.u32 %s79_s1, 4  ;;  %s29_s11 = scalar_lea.hbm %s78_s0, 2048  ;;  %s14_s8 = int_to_ptr.vmem [resolvable:$true] %s13_s8 }
   0x2   :  { %p30_p0 = scmp.ne.s32.totalorder %s78_s0, %s29_s11  ;;  %p33_p1 = scmp.lt.u32.totalorder %s29_s11, %s78_s0 }
   0x4   :  { %p35_p2 = pnand %p33_p1, %p30_p0 }
   0x6   :  { %38 = shalt.err (!%p35_p2)  }
   0x7   :  { %s39_s16 = scalar_lea.vmem %s14_s8, 2048  ;;  %p44_p4 = scmp.lt.s32.totalorder %s14_s8, %s14_s8 }
   0x8   :  { %p40_p3 = scmp.ne.s32.totalorder %s14_s8, %s39_s16  ;;  %p45_p5 = scmp.lt.s32.totalorder %s39_s16, %s39_s16 }
   0xa   :  { %p46_p6 = por %p45_p5, %p44_p4 }
   0xc   :  { %p47_p7 = pnand %p46_p6, %p40_p3 }
   0xe   :  { %50 = shalt.err (!%p47_p7)  }
   0xf   :  { %16 = dma.hbm_to_vmem [thread:$0]  %s78_s0, 2048, %s14_s8, [#allocation2] }
  0x10   :  { %51 = dma.done.wait [#allocation2], 2048 }
  0x11   :  { %52 = vsyncadd [#allocation2], 4294965248 }
  0x12   :  { %22 = vsyncmov [#allocation2] }
  0x15   :  { %s23_s18 = vpop.sfrf %22 }
  0x16   :  { %p28_p8 = scmp.ne.s32.totalorder %s23_s18, 0 }
  0x18   :  { %27 = shalt.err (%p28_p8)  }

</bundles_post_ra>
